<compile_context>
chip_gen: v7x
topology: tpu7x:2x2x1
jax: 0.10.0
libtpu: 0.0.40
codegen_flags: <defaults>
</compile_context>

<pallas_src>
import jax
import jax.numpy as jnp
from jax.experimental import pallas as pl
from jax.experimental.pallas import tpu as pltpu


# ----------------------------------------------------------------------------
# Kernels
# ----------------------------------------------------------------------------
def _ddpm_noise_kernel(sab_ref, s1m_ref, x0_ref, eta_ref, out_ref):
    # sab_ref / s1m_ref: (TB, 1)  -- broadcast over the lane (feature) axis.
    # x0_ref / eta_ref / out_ref: (TB, TF)
    out_ref[...] = sab_ref[...] * x0_ref[...] + s1m_ref[...] * eta_ref[...]


def _ddpm_noise_gen_kernel(seed_ref, sab_ref, s1m_ref, x0_ref, out_ref):
    # eta=None path: draw the Gaussian noise in-kernel (no eta HBM traffic).
    # Unique seed per grid block so every tile gets independent randoms.
    block_id = pl.program_id(0) * pl.num_programs(1) + pl.program_id(1)
    pltpu.prng_seed(seed_ref[0] + block_id)
    eta = pltpu.stateful_normal(x0_ref.shape, jnp.float32)
    out_ref[...] = (sab_ref[...] * x0_ref[...]
                    + s1m_ref[...] * eta.astype(x0_ref.dtype))


# ----------------------------------------------------------------------------
# Tiling
# ----------------------------------------------------------------------------
def _round_up(x, m):
    return ((x + m - 1) // m) * m


def _pick_tiles(n, chw_p, itemsize, target_tile_bytes=4 * 1024 * 1024):
    """Pick (TB, TF) so one tile is ~target_tile_bytes and VMEM always holds.

    Rules honored:
      * sublane dim: multiple of 8 or the full batch dim.
      * lane dim:    multiple of 128 or the full (padded) feature dim.
      * huge rows -> tile the feature axis instead of forcing a giant tile.
      * if possible, keep >= 2 grid steps so v7x's two TCs both stream.
    """
    row_bytes = chw_p * itemsize
    if row_bytes <= target_tile_bytes:
        tf = chw_p
        rows = max(1, target_tile_bytes // row_bytes)
        tb = n if rows >= n else max(8, (rows // 8) * 8)
    else:
        # A single row exceeds the budget: keep a small row group and chunk CHW.
        tb = n if n < 8 else 8
        per_row_bytes = max(1, target_tile_bytes // tb)
        tf = min(chw_p, max(128, (per_row_bytes // itemsize) // 128 * 128))

    # Megacore (v7x): avoid a 1-step grid when we can cheaply split an axis.
    if tb >= n and tf >= chw_p:
        if n >= 16:
            tb = max(8, _round_up(-(-n // 2), 8))          # round_up(cdiv(n,2), 8)
        elif chw_p >= 256:
            tf = max(128, ((chw_p // 2) // 128) * 128)      # 2 feature chunks
    return tb, tf


# ----------------------------------------------------------------------------
# Wrapper (MyDDPM.forward)
# ----------------------------------------------------------------------------
def ddpm_forward(x0, t, eta=None, alpha_bars=None, *, key=None, seed=0):
    """Pallas implementation of MyDDPM.forward.

    x0:          (n, c, h, w) float32, NCHW
    t:           (n,) int32 timesteps
    eta:         (n, c, h, w) noise; generated in-kernel when None
    alpha_bars:  (n_steps,) float32 cumulative products of alphas
    """
    n, c, h, w = x0.shape
    chw = c * h * w
    dtype = x0.dtype

    # Tiny per-batch scalar prep (n-element gather + two sqrts) stays in the
    # wrapper; it is negligible next to the streaming traffic.
    a_bar = alpha_bars[t].astype(jnp.float32)                   # (n,)
    sqrt_ab = jnp.sqrt(a_bar).reshape(n, 1).astype(dtype)       # (n, 1)
    sqrt_1mab = jnp.sqrt(1.0 - a_bar).reshape(n, 1).astype(dtype)

    # Lane-dense flatten, padded so the last dim is a multiple of 128.
    chw_p = _round_up(chw, 128)

    def _flat_pad(a):
        a = a.reshape(n, chw)
        if chw_p != chw:
            a = jnp.pad(a, ((0, 0), (0, chw_p - chw)))
        return a

    x0_flat = _flat_pad(x0)

    tb, tf = _pick_tiles(n, chw_p, dtype.itemsize)
    grid = (pl.cdiv(n, tb), pl.cdiv(chw_p, tf))

    img_spec = pl.BlockSpec((tb, tf), lambda i, j: (i, j))
    scale_spec = pl.BlockSpec((tb, 1), lambda i, j: (i, 0))
    out_shape = jax.ShapeDtypeStruct((n, chw_p), dtype)
    cparams = pltpu.CompilerParams(
        dimension_semantics=("parallel", "parallel"),
        vmem_limit_bytes=48 * 1024 * 1024,
    )

    if eta is None:
        # Generate the Gaussian noise inside the kernel (saves one full-array
        # HBM read + one full-array HBM write vs. streaming eta through HBM).
        seed_arr = jnp.asarray([seed], dtype=jnp.int32)
        try:
            out_flat = pl.pallas_call(
                _ddpm_noise_gen_kernel,
                out_shape=out_shape,
                grid=grid,
                in_specs=[
                    pl.BlockSpec(memory_space=pltpu.MemorySpace.SMEM),  # seed
                    scale_spec, scale_spec, img_spec,
                ],
                out_specs=img_spec,
                compiler_params=cparams,
            )(seed_arr, sqrt_ab, sqrt_1mab, x0_flat)
            return out_flat[:, :chw].reshape(n, c, h, w)
        except Exception:
            # TODO(synk): drop this fallback once the in-kernel PRNG lowering
            # is confirmed on all target generations.
            if key is None:
                key = jax.random.PRNGKey(seed)
            eta = jax.random.normal(key, (n, c, h, w), dtype=dtype)

    eta_flat = _flat_pad(eta)
    out_flat = pl.pallas_call(
        _ddpm_noise_kernel,
        out_shape=out_shape,
        grid=grid,
        in_specs=[scale_spec, scale_spec, img_spec, img_spec],
        out_specs=img_spec,
        compiler_params=cparams,
    )(sqrt_ab, sqrt_1mab, x0_flat, eta_flat)
    return out_flat[:, :chw].reshape(n, c, h, w)


# ----------------------------------------------------------------------------
# Deterministic schedule setup (matches MyDDPM.__init__)
# ----------------------------------------------------------------------------
def make_alpha_bars(n_steps=200, min_beta=1e-4, max_beta=0.02):
    betas = jnp.linspace(min_beta, max_beta, n_steps, dtype=jnp.float32)
    alphas = 1.0 - betas
    return jnp.cumprod(alphas)


# Pure-JAX reference for validation.
def ddpm_forward_ref(x0, t, eta, alpha_bars):
    n = x0.shape[0]
    a_bar = alpha_bars[t]
    return (jnp.sqrt(a_bar).reshape(n, 1, 1, 1) * x0
            + jnp.sqrt(1.0 - a_bar).reshape(n, 1, 1, 1) * eta)


# NOTE: MyDDPM.backward(x, t) just calls self.network(x, t); the denoising
# network is an external module not defined in the spec, so it is not
# implemented here.
# TODO(synk): plug in a denoising-network kernel if MyDDPM.backward is needed.

if __name__ == "__main__":
    key = jax.random.PRNGKey(0)
    k_x, k_t, k_eta = jax.random.split(key, 3)

    n, c, h, w = 2, 4, 16, 16
    n_steps = 200

    x0 = jax.random.normal(k_x, (n, c, h, w), dtype=jnp.float32)
    t = jax.random.randint(k_t, (n,), 0, n_steps, dtype=jnp.int32)
    eta = jax.random.normal(k_eta, (n, c, h, w), dtype=jnp.float32)

    alpha_bars = make_alpha_bars(n_steps)

    # Path 1: eta provided -> must match the pure-JAX reference exactly.
    noisy = ddpm_forward(x0, t, eta, alpha_bars)
    noisy = jax.block_until_ready(noisy)
    expected = ddpm_forward_ref(x0, t, eta, alpha_bars)
    assert noisy.shape == (n, c, h, w)
    assert jnp.allclose(noisy, expected, atol=1e-5, rtol=1e-5)

    # Path 2: eta=None -> noise generated in-kernel; check shape / sanity only
    # (different RNG stream than torch.randn, by construction).
    noisy_rng = ddpm_forward(x0, t, None, alpha_bars, seed=1234)
    noisy_rng = jax.block_until_ready(noisy_rng)
    assert noisy_rng.shape == (n, c, h, w)
    assert bool(jnp.all(jnp.isfinite(noisy_rng)))

    print("KERNEL_OK")
</pallas_src>

<mosaic_0001>
module attributes {stable_mosaic.version = 11 : i64} {
  func.func @_ddpm_noise_kernel(%arg0: i32, %arg1: i32, %arg2: memref<2x1xf32, #tpu.memory_space<vmem>>, %arg3: memref<2x1xf32, #tpu.memory_space<vmem>>, %arg4: memref<2x512xf32, #tpu.memory_space<vmem>>, %arg5: memref<2x512xf32, #tpu.memory_space<vmem>>, %arg6: memref<2x512xf32, #tpu.memory_space<vmem>>) attributes {dimension_semantics = [#tpu.dimension_semantics<parallel>, #tpu.dimension_semantics<parallel>], iteration_bounds = array<i64: 1, 2>, scalar_prefetch = 0 : i64, scratch_operands = 0 : i64, tpu.core_type = #tpu.core_type<tc>, window_params = [{transform_indices = @transform_0, window_bounds = array<i64: 2, 1>}, {transform_indices = @transform_1, window_bounds = array<i64: 2, 1>}, {transform_indices = @transform_2, window_bounds = array<i64: 2, 512>}, {transform_indices = @transform_3, window_bounds = array<i64: 2, 512>}, {transform_indices = @transform_4, window_bounds = array<i64: 2, 512>}]} {
    %c0 = arith.constant 0 : index
    %c0_0 = arith.constant 0 : index
    %0 = vector.load %arg2[%c0, %c0_0] : memref<2x1xf32, #tpu.memory_space<vmem>>, vector<2x1xf32>
    %c0_1 = arith.constant 0 : index
    %c0_2 = arith.constant 0 : index
    %1 = vector.load %arg4[%c0_1, %c0_2] : memref<2x512xf32, #tpu.memory_space<vmem>>, vector<2x512xf32>
    %2 = vector.broadcast %0 : vector<2x1xf32> to vector<2x512xf32>
    %3 = arith.mulf %2, %1 : vector<2x512xf32>
    %c0_3 = arith.constant 0 : index
    %c0_4 = arith.constant 0 : index
    %4 = vector.load %arg3[%c0_3, %c0_4] : memref<2x1xf32, #tpu.memory_space<vmem>>, vector<2x1xf32>
    %c0_5 = arith.constant 0 : index
    %c0_6 = arith.constant 0 : index
    %5 = vector.load %arg5[%c0_5, %c0_6] : memref<2x512xf32, #tpu.memory_space<vmem>>, vector<2x512xf32>
    %6 = vector.broadcast %4 : vector<2x1xf32> to vector<2x512xf32>
    %7 = arith.mulf %6, %5 : vector<2x512xf32>
    %8 = arith.addf %3, %7 : vector<2x512xf32>
    %c0_7 = arith.constant 0 : index
    %c0_8 = arith.constant 0 : index
    %9 = vector.load %arg6[%c0_7, %c0_8] : memref<2x512xf32, #tpu.memory_space<vmem>>, vector<2x512xf32>
    tpu.vector_store %arg6[%c0_7, %c0_8], %8 {strides = array<i32>} : memref<2x512xf32, #tpu.memory_space<vmem>>, vector<2x512xf32>,
    return
  }
  func.func @transform_0(%arg0: i32, %arg1: i32) -> (i32, i32) {
    %c0_i32 = arith.constant 0 : i32
    %c0_i32_0 = arith.constant 0 : i32
    return %arg0, %c0_i32 : i32, i32
  }
  func.func @transform_1(%arg0: i32, %arg1: i32) -> (i32, i32) {
    %c0_i32 = arith.constant 0 : i32
    %c0_i32_0 = arith.constant 0 : i32
    return %arg0, %c0_i32 : i32, i32
  }
  func.func @transform_2(%arg0: i32, %arg1: i32) -> (i32, i32) {
    %c0_i32 = arith.constant 0 : i32
    return %arg0, %arg1 : i32, i32
  }
  func.func @transform_3(%arg0: i32, %arg1: i32) -> (i32, i32) {
    %c0_i32 = arith.constant 0 : i32
    return %arg0, %arg1 : i32, i32
  }
  func.func @transform_4(%arg0: i32, %arg1: i32) -> (i32, i32) {
    %c0_i32 = arith.constant 0 : i32
    return %arg0, %arg1 : i32, i32
  }
}

</mosaic_0001>

<bundles_post_ra>
// kernel: tpu_custom_call.1
= control target key start
LH: loop header
LB: loop body
LE: loop exit
PB: predicated region body
PF: predicated region fallthrough
CT: control target
= control target key end

     0   :  { %9 = vsyncpa [#allocation3], 0  ;;  %s963_s0 = inlined_call_operand.vmem [shape: f32[2,1], index: 0, kind: input, shape index: {}]   ;;  %s964_s1 = inlined_call_operand.vmem [shape: f32[2,1], index: 1, kind: input, shape index: {}]   ;;  %s965_s2 = inlined_call_operand.hbm [shape: f32[2,1024], index: 2, kind: input, shape index: {}]   ;;  %s966_s3 = inlined_call_operand.vmem [shape: f32[2,1024], index: 3, kind: input, shape index: {}]   ;;  %s967_s4 = inlined_call_operand.hbm [shape: f32[2,1024], index: 4, kind: output, shape index: {}]  }
   0x1   :  { %11 = vsyncpa [#allocation3 + $0x1], 0 }
   0x2   :  { %12 = vsyncpa [#allocation4], 0 }
   0x3   :  { %14 = vsyncpa [#allocation4 + $0x1], 0  ;;  %s777_s15 = smov 0   ;;  %s779_s16 = smov 0  }
   0x4   :  { %s781_s17 = smov 0   ;;  %s783_s18 = smov 0  }
   0x5   :  { %s785_s19 = smov 0   ;;  %s787_s20 = smov 0  }
   0x6 LB: > { %s546_s21 = sadd.s32 4294967295, %s746_s20   ;;  %s547_s22 = sadd.s32 4294967294, %s746_s20   ;;  %s746_s20 = sphi %s787_s20, %s20_s20   ;;  %s742_s19 = sphi %s785_s19, %s983_s19   ;;  %s738_s18 = sphi %s783_s18, %s982_s18   ;;  %s734_s17 = sphi %s781_s17, %s981_s17   ;;  %s730_s16 = sphi %s779_s16, %s980_s16   ;;  %s726_s15 = sphi %s777_s15, %s979_s15  }
   0x7   : > { %s29_s23 = sadd.s32 1, %s742_s19  ;;  %s93_s24 = sadd.s32 1, %s734_s17 }
   0x8   : > { %p30_p0 = scmp.ge.s32.totalorder %s29_s23, 2  ;;  %p100_p1 = scmp.ne.s32.totalorder %s734_s17, %s730_s16 }
   0x9   : > { %p101_p2 = scmp.eq.s32.totalorder %s746_s20, 0  ;;  %p106_p3 = scmp.ne.s32.totalorder %s730_s16, %s726_s15 }
   0xa   : > { %s985_s23 = smov (%p30_p0, %s29_s23), 0  ;;  %p107_p5 = scmp.eq.s32.totalorder %s546_s21, 0 }
   0xb   : > { %p818_p4 = por %p101_p2, %p100_p1  ;;  %s89_s26 = ssub.s32 %s742_s19, %s985_s23 }
   0xc   : > { %p160_p6 = scmp.eq.s32.totalorder %s546_s21, 1  ;;  %p91_p7 = scmp.eq.s32.totalorder %s89_s26, 0 }
   0xd   : > { %p824_p8 = por %p107_p5, %p106_p3  ;;  %p166_p10 = scmp.eq.s32.totalorder %s547_s22, 1 }
   0xe   : > { %p828_p9 = por %p160_p6, %p100_p1  ;;  %p579_p13 = scmp.lt.s32.totalorder %s746_s20, 2 }
   0xf   : > { %s833_s29 = scalar_select %p91_p7, %s734_s17, %s93_s24  }
  0x10   : > { %s971_s28 = scalar_select %p828_p9, 1, 0 }
  0x11   : > { %p835_p11 = por %p166_p10, %p106_p3  ;;  %s200_s5 = sand.u32 1, %s734_s17  }
  0x12   : > { %s552_s6 = sshll.u32 %s200_s5, 3  ;;  %s565_s7 = sshll.u32 %s742_s19, 7 }
  0x13   : > { %s972_s30 = scalar_select %p835_p11, 1, 0 }
  0x14   : > { %s846_s10 = scalar_lea.hbm %s965_s2, %s565_s7  ;;  %s204_s11 = scalar_lea.vmem [#allocation2], %s552_s6 }
  0x15   : > { %s214_s12 = sshll.u32 %s204_s11, 4  ;;  %p852_p0 = pnand %p579_p13, %p818_p4  ;;  %s848_s12 = int_to_ptr.vmem [resolvable:$true] %s214_s12 }
  0x16   : > { %s201_s14 = scalar_lea.sflag [#allocation3], %s200_s5  ;;  %s634_s21 = scalar_lea.hbm %s846_s10, 128 }
  0x17   : > { %p635_p3 = scmp.ne.s32.totalorder %s846_s10, %s634_s21  ;;  %p636_p5 = pneg %p852_p0 }
  0x18   : > { %s639_s25 = scalar_lea.hbm %s965_s2, 256  ;;  %p640_p4 = scmp.lt.u32.totalorder %s846_s10, %s965_s2 }
  0x19   : > { %p637_p6 = pnand %p636_p5, %p635_p3  ;;  %p641_p10 = scmp.lt.u32.totalorder %s639_s25, %s634_s21 }
  0x1a   : > { %p643_p12 = scmp.lt.u32.totalorder %s634_s21, %s846_s10 }
  0x1b   : > { %p638_p7 = pneg %p637_p6  ;;  %p642_p13 = por %p641_p10, %p640_p4 }
  0x1d   : > { %p644_p1 = por %p643_p12, %p642_p13 }
  0x1f   : > { %p645_p2 = pnand %p644_p1, %p638_p7 }
  0x21   : > { %648 = shalt.err (!%p645_p2)
}
  0x22   : > { %s649_s5 = scalar_lea.vmem %s848_s12, 128  ;;  %s748_s7 = smov [#allocation2]  }
  0x23   : > { %p650_p3 = scmp.ne.s32.totalorder %s848_s12, %s649_s5  ;;  %s654_s8 = sshll.u32 %s748_s7, 4  ;;  %s655_s8 = int_to_ptr.vmem [resolvable:$false] %s654_s8 }
  0x24   : > { %s656_s9 = scalar_lea.vmem %s655_s8, 256  ;;  %p657_p9 = scmp.lt.s32.totalorder %s848_s12, %s655_s8 }
  0x25   : > { %p652_p6 = pnand %p650_p3, %p636_p5  ;;  %p658_p4 = scmp.lt.s32.totalorder %s656_s9, %s649_s5 }
  0x27   : > { %p653_p11 = pneg %p652_p6  ;;  %p659_p10 = por %p658_p4, %p657_p9 }
  0x29   : > { %p660_p12 = pnand %p659_p10, %p653_p11 }
  0x2b   : > { %663 = shalt.err (!%p660_p12)
}
  0x2c   : > { %574 = dma.hbm_to_vmem [thread:$0]  (!%p852_p0), %s846_s10, 128, %s848_s12, %s201_s14  }
  0x2d   : > { %p974_p1 = scmp.lt.s32.totalorder %s746_s20, 3  ;;  %p975_p2 = scmp.ge.s32.totalorder %s746_s20, 1 }
  0x2f   : > { %p233_p5 = pnand %p975_p2, %p974_p1 }
  0x30   : > { %s888_s11 = sand.u32 (!%p233_p5), 1, %s730_s16  }
  0x31   : > { %236 = sbr.rel (%p233_p5) target bundleno = 215 (0xd7), region = 36  ;;  %s556_s21 = sshll.u32 (!%p233_p5), %s888_s11, 3 }
  0x32   : > { %s239_s22 = scalar_lea.sflag (!%p233_p5), [#allocation3], %s888_s11  ;;  %s242_s13 = scalar_lea.vmem (!%p233_p5), [#allocation2], %s556_s21 }
  0x38   : > { %717 = dma.done.wait (%p824_p8), %s239_s22, 128  }
  0x39   : > { %719 = vsyncadd (%p824_p8), %s239_s22, 4294967168  ;;  %v749_v0 = vmov 0   ;;  %v304_v1 = vld [vmem:[%s963_s0] sm:$0x3]  ;;  %s558_s25 = sshll.u32 %s738_s18, 2  ;;  %v316_v5 = vlaneseq  ;;  %s566_s7 = sshll.u32 %s738_s18, 7 }
  0x3a   : > { %631 = vset.pattern.permute.xlu0 %v749_v0  ;;  %v337_v2 = vld [vmem:[%s964_s1] sm:$0x3]  ;;  %p296_p9 = scmp.lt.s32.totalorder %s558_s25, 7  ;;  %v750_v3 = vmov 1983009808   ;;  %s283_s8 = scalar_lea.vmem [#allocation5], %s556_s21 }
  0x3b   : > { %308 = vperm.xlu0 %631, %v304_v1   ;;  %v314_v4 = vunpack.c.l.s4 %v750_v3  ;;  %v317_v7 = vshrl.u32 %v316_v5, 7  ;;  %v305_v8 = vld [vmem:[%s242_s13] sm:$0xff]  ;;  %s414_s9 = sshll.u32 %s283_s8, 4  ;;  %s914_s10 = scalar_lea.hbm %s967_s4, %s566_s7  ;;  %s916_s9 = int_to_ptr.vmem [resolvable:$true] %s414_s9 }
  0x3c   : > { %s987_s25 = smov (!%p296_p9, %s558_s25), 7  ;;  %v312_v10 = vcombine.high %v305_v8, %v305_v8  ;;  %s398_s12 = scalar_lea.sflag [#allocation4], %s888_s11 }
  0x3d   : > { %s559_s27 = sshll.u32 %s987_s25, 1  ;;  %v315_v6 = vunpack.c.0.s8 %v314_v4  ;;  %s664_s14 = scalar_lea.vmem %s916_s9, 128 }
  0x3e   : > { %s301_s5 = scalar_lea.vmem %s966_s3, %s559_s27  ;;  %p665_p8 = scmp.ne.s32.totalorder %s916_s9, %s664_s14 }
  0x3f   : > { %341 = vperm.xlu0 %631, %v337_v2   ;;  %v338_v9 = vld [vmem:[%s301_s5] sm:$0xff]  ;;  %v318_v11 = vsub.s32 %v315_v6, %v317_v7  ;;  %p976_p11 = scmp.ne.s32.totalorder %s971_s28, 0  ;;  %s751_s18 = smov [#allocation5]  }
  0x40   : > { %v345_v12 = vcombine.high %v338_v9, %v338_v9  ;;  %s668_s21 = sshll.u32 %s751_s18, 4  ;;  %s669_s21 = int_to_ptr.vmem [resolvable:$false] %s668_s21 }
  0x41   : > { %v319_v13 = vrot.slane %v305_v8, %v318_v11  ;;  %v326_v14 = vrot.slane %v312_v10, %v318_v11  ;;  %v352_v15 = vrot.slane %v338_v9, %v318_v11  ;;  %p666_p0 = pnand %p665_p8, %p976_p11  ;;  %s670_s24 = scalar_lea.vmem %s669_s21, 256 }
  0x42   : > { %v359_v16 = vrot.slane %v345_v12, %v318_v11  ;;  %p671_p13 = scmp.lt.s32.totalorder %s916_s9, %s669_s21  ;;  %p672_p3 = scmp.lt.s32.totalorder %s670_s24, %s664_s14 }
  0x43   : > { %v327_v17 = vcombine.high %v319_v13, %v319_v13  ;;  %v328_v18 = vcombine.high %v326_v14, %v326_v14  ;;  %v360_v20 = vcombine.high %v352_v15, %v352_v15  ;;  %p667_p7 = pneg %p666_p0 }
  0x44   : > { %v361_v21 = vcombine.high %v359_v16, %v359_v16  ;;  %p673_p6 = por %p672_p3, %p671_p13 }
  0x46   : > { %p674_p4 = pnand %p673_p6, %p667_p7 }
  0xba   : > { %v309_v19 = vpop.permute.xlu0 %308 }
  0xbb   : > { %v333_v22 = vmul.f32 %v319_v13, %v309_v19  ;;  %v334_v23 = vmul.f32 %v327_v17, %v309_v19  ;;  %v335_v24 = vmul.f32 %v326_v14, %v309_v19  ;;  %v336_v25 = vmul.f32 %v328_v18, %v309_v19 }
  0xbe   : > { %v342_v26 = vpop.permute.xlu0 %341 }
  0xbf   : > { %v366_v27 = vmul.f32 %v352_v15, %v342_v26  ;;  %v367_v28 = vmul.f32 %v360_v20, %v342_v26  ;;  %v368_v29 = vmul.f32 %v359_v16, %v342_v26  ;;  %v369_v30 = vmul.f32 %v361_v21, %v342_v26 }
  0xc1   : > { %v370_v31 = vadd.f32 %v366_v27, %v333_v22  ;;  %v371_v32 = vadd.f32 %v367_v28, %v334_v23  ;;  %v372_v33 = vadd.f32 %v368_v29, %v335_v24  ;;  %v373_v34 = vadd.f32 %v369_v30, %v336_v25 }
  0xc3   : > { %v378_v35 = vcombine.low %v370_v31, %v371_v32  ;;  %v379_v36 = vcombine.low %v372_v33, %v373_v34 }
  0xc5   : > { %v386_v37 = vrot.slane %v378_v35, %v318_v11  ;;  %v393_v38 = vrot.slane %v379_v36, %v318_v11 }
  0xc7   : > { %v394_v39 = vcombine.low %v386_v37, %v393_v38 }
  0xc9   : > { %396 = vst [vmem:[%s283_s8] sm:$0xff] %v394_v39 }
  0xca   : > { %677 = shalt.err (!%p674_p4)
}
  0xcb   : > { %s678_s11 = scalar_lea.hbm %s914_s10, 128  ;;  %s682_s26 = scalar_lea.hbm %s967_s4, 256 }
  0xcc   : > { %p679_p10 = scmp.ne.s32.totalorder %s914_s10, %s678_s11  ;;  %p683_p2 = scmp.lt.u32.totalorder %s914_s10, %s967_s4 }
  0xcd   : > { %p684_p5 = scmp.lt.u32.totalorder %s682_s26, %s678_s11  ;;  %p686_p8 = scmp.lt.u32.totalorder %s678_s11, %s914_s10 }
  0xce   : > { %p680_p12 = pnand %p679_p10, %p976_p11 }
  0xcf   : > { %p685_p9 = por %p684_p5, %p683_p2 }
  0xd0   : > { %p681_p1 = pneg %p680_p12 }
  0xd1   : > { %p687_p0 = por %p686_p8, %p685_p9 }
  0xd3   : > { %p688_p7 = pnand %p687_p0, %p681_p1 }
  0xd5   : > { %691 = shalt.err (!%p688_p7)
}
  0xd6   : > { %569 = dma.vmem_to_hbm [thread:$0]  (%p976_p11), %s916_s9, 128, %s914_s10, %s398_s12  }
  0xd7 PF: > { %s426_s7 = sand.u32 1, %s726_s15   ;;  %p977_p13 = scmp.ne.s32.totalorder %s972_s30, 0 }
  0xd8   : > { %p978_p3 = scmp.ge.s32.totalorder %s746_s20, 2  ;;  %s427_s8 = scalar_lea.sflag [#allocation4], %s426_s7 }
  0xda   : > { %p576_p6 = pnand %p978_p3, %p977_p13 }
  0xdc   : > { %721 = dma.done.wait (!%p576_p6), %s427_s8, 128  }
  0xdd   : > { %723 = vsyncadd (!%p576_p6), %s427_s8, 4294967168  ;;  %s20_s20 = sadd.s32 1, %s746_s20   ;;  %s979_s15 = smov %s730_s16 }
  0xde   : > { %p17_p4 = scmp.ge.s32.totalorder %s20_s20, 4   ;;  %s980_s16 = smov %s734_s17 }
  0xdf   : > { %s981_s17 = smov %s833_s29  ;;  %s982_s18 = smov %s742_s19 }
  0xe0   : > { %s983_s19 = smov %s985_s23  ;;  %19 = sbr.rel (!%p17_p4) target bundleno = 6 (0x6), region = 90 }
  0xe7   :  { %432 = vsyncpa [#allocation3], 1 }
  0xe8   :  { %434 = vsyncpa [#allocation3 + $0x1], 1 }
  0xe9   :  { %435 = vsyncpa [#allocation4], 1 }
  0xea   :  { %437 = vsyncpa [#allocation4 + $0x1], 1 }

</bundles_post_ra>
